<compile_context>
chip_gen: v7x
topology: tpu7x:2x2x1
jax: 0.10.0
libtpu: 0.0.40
codegen_flags: <defaults>
</compile_context>

<pallas_src>
import numpy as np
import jax
import jax.numpy as jnp
from jax import lax
from jax.experimental import pallas as pl
from jax.experimental.pallas import tpu as pltpu


# Safe scoped-VMEM limit on v5e/v6e (128 MiB physical) and v7x (64 MiB).
_VMEM_LIMIT_BYTES = 48 * 1024 * 1024


# ---------------------------------------------------------------------------
# Kernel 1: layer-invariant hypergraph aggregation  s = D^-1 H B^-1 H^T x
# grid = (F // tf,): feature slabs of x/s stream; H, dinv, binv stay resident.
# TODO(synk): for graphs where the N*M incidence does not fit VMEM, add a
# node-tiling axis and accumulate the edge features across node tiles.
# ---------------------------------------------------------------------------
def hyperedge_aggregate_kernel(h_ref, x_ref, dinv_ref, binv_ref, s_ref):
    h = h_ref[...].astype(jnp.float32)          # 0/1 incidence, exact upcast
    # node -> hyperedge aggregation: contract the node axis of H directly
    # (no H^T copy anywhere), scaled by 1/|e| (hyperedge degree).
    edge_feat = lax.dot_general(
        h, x_ref[...],
        dimension_numbers=(((0,), (0,)), ((), ())),
        preferred_element_type=jnp.float32) * binv_ref[...]
    # hyperedge -> node aggregation, scaled by 1/deg(node).
    s_ref[...] = jnp.dot(h, edge_feat,
                         preferred_element_type=jnp.float32) * dinv_ref[...]


# ---------------------------------------------------------------------------
# Kernel 2: fused per-layer transform + L2 normalize + layer-sum.
# grid = (node_tiles, L); the output block is resident across the layer axis.
# ---------------------------------------------------------------------------
def hyperconv_layer_kernel(s_ref, w_ref, b_ref, o_ref):
    @pl.when(pl.program_id(1) == 0)
    def _():
        o_ref[...] = jnp.zeros_like(o_ref)

    node = jnp.dot(s_ref[...], w_ref[...],
                   preferred_element_type=jnp.float32) + b_ref[...]
    # F.normalize(p=2, dim=-1): x / max(||x||, 1e-12) == x * rsqrt(max(ss, 1e-24))
    ss = jnp.sum(node * node, axis=-1, keepdims=True)
    o_ref[...] += node * lax.rsqrt(jnp.maximum(ss, 1e-24))


def _pick_node_tile(n):
    for t in (256, 128, 64, 32, 16, 8):
        if n % t == 0:
            return t
    return n


def _pick_feat_tile(f):
    for t in (512, 256, 128):
        if f % t == 0:
            return t
    return f


def hyperconv_forward(x, edge_index, weights, biases, num_hyperedges):
    """x: [N, F] f32; edge_index: [2, E] int32 (row0=node, row1=hyperedge);
    weights: [L, F, F] f32; biases: [L, F] f32."""
    N, F = x.shape
    L = weights.shape[0]
    M = num_hyperedges

    # Glue: dense incidence + degree normalizers (scatter has no efficient
    # Pallas equivalent; this is one-time setup).
    H = jnp.zeros((N, M), jnp.float32).at[edge_index[0], edge_index[1]].set(1.0)
    deg_n = jnp.sum(H, axis=1, keepdims=True)            # node degree D
    deg_e = jnp.sum(H, axis=0)[:, None]                  # hyperedge degree B
    dinv = jnp.where(deg_n > 0, 1.0 / deg_n, 0.0)        # [N, 1]
    binv = jnp.where(deg_e > 0, 1.0 / deg_e, 0.0)        # [M, 1]
    h_bf16 = H.astype(jnp.bfloat16)                      # lossless (0/1)

    # One-shot, layer-invariant aggregation:  s = D^-1 H B^-1 H^T x
    # Feature-tiled grid; H / dinv / binv resident across all feature steps.
    tf = _pick_feat_tile(F)
    s = pl.pallas_call(
        hyperedge_aggregate_kernel,
        out_shape=jax.ShapeDtypeStruct((N, F), jnp.float32),
        grid=(F // tf,),
        in_specs=[
            pl.BlockSpec((N, M), lambda f: (0, 0)),   # H (resident)
            pl.BlockSpec((N, tf), lambda f: (0, f)),  # x feature slab
            pl.BlockSpec((N, 1), lambda f: (0, 0)),   # dinv (resident)
            pl.BlockSpec((M, 1), lambda f: (0, 0)),   # binv (resident)
        ],
        out_specs=pl.BlockSpec((N, tf), lambda f: (0, f)),
        compiler_params=pltpu.CompilerParams(
            dimension_semantics=("parallel",),
            vmem_limit_bytes=_VMEM_LIMIT_BYTES),
    )(h_bf16, x, dinv, binv)

    # Fused per-layer transform, tiled over nodes (parallel) x layers (acc).
    tn = _pick_node_tile(N)
    grid = (N // tn, L)

    return pl.pallas_call(
        hyperconv_layer_kernel,
        out_shape=jax.ShapeDtypeStruct((N, F), jnp.float32),
        grid=grid,
        in_specs=[
            pl.BlockSpec((tn, F), lambda i, l: (i, 0)),                   # s (resident per node tile)
            pl.BlockSpec((pl.Squeezed(), F, F), lambda i, l: (l, 0, 0)),  # W_l
            pl.BlockSpec((pl.Squeezed(), F), lambda i, l: (l, 0)),        # bias_l
        ],
        out_specs=pl.BlockSpec((tn, F), lambda i, l: (i, 0)),
        compiler_params=pltpu.CompilerParams(
            dimension_semantics=("parallel", "arbitrary"),
            vmem_limit_bytes=_VMEM_LIMIT_BYTES),
    )(s, weights, biases)


def hyperconv_reference(x, edge_index, weights, biases, num_hyperedges):
    """Pure-JAX reference mirroring the PyTorch/PyG math layer by layer."""
    N, F = x.shape
    M = num_hyperedges
    H = jnp.zeros((N, M), jnp.float32).at[edge_index[0], edge_index[1]].set(1.0)
    deg_n = jnp.sum(H, axis=1, keepdims=True)
    deg_e = jnp.sum(H, axis=0)[:, None]
    dinv = jnp.where(deg_n > 0, 1.0 / deg_n, 0.0)
    binv = jnp.where(deg_e > 0, 1.0 / deg_e, 0.0)
    out = jnp.zeros((N, F), jnp.float32)
    with jax.default_matmul_precision("highest"):
        for l in range(weights.shape[0]):
            xw = x @ weights[l]
            edge_feat = (H.T @ xw) * binv
            node = (H @ edge_feat) * dinv + biases[l][None, :]
            nrm = jnp.sqrt(jnp.sum(node * node, axis=-1, keepdims=True))
            out = out + node / jnp.maximum(nrm, 1e-12)
    return out


if __name__ == "__main__":
    # Small synthetic problem.  F is a multiple of 128 (lane-dense output,
    # full MXU lanes); N is a multiple of 8 (clean node tiles).
    N, M, F, L = 16, 8, 128, 3

    key = jax.random.PRNGKey(0)
    kx, kh, kw, kb = jax.random.split(key, 4)

    x = jax.random.normal(kx, (N, F), dtype=jnp.float32)

    # Random hypergraph incidence (deterministic); derive edge_index [2, E].
    mask = np.asarray(jax.random.bernoulli(kh, p=0.35, shape=(N, M)))
    nodes, hedges = np.nonzero(mask)
    edge_index = jnp.asarray(np.stack([nodes, hedges], axis=0), dtype=jnp.int32)

    # Deterministic parameter init (glorot-ish weights, small biases).
    weights = jax.random.normal(kw, (L, F, F), dtype=jnp.float32) / np.sqrt(F)
    biases = 0.1 * jax.random.normal(kb, (L, F), dtype=jnp.float32)

    out = hyperconv_forward(x, edge_index, weights, biases, num_hyperedges=M)
    out = jax.block_until_ready(out)

    ref = hyperconv_reference(x, edge_index, weights, biases, num_hyperedges=M)
    np.testing.assert_allclose(np.asarray(out), np.asarray(ref),
                               rtol=1e-4, atol=1e-4)
    print("KERNEL_OK")
</pallas_src>

<mosaic_0001>
module attributes {stable_mosaic.version = 11 : i64} {
  func.func @hyperedge_aggregate_kernel(%arg0: i32, %arg1: memref<16x8xbf16, #tpu.memory_space<vmem>>, %arg2: memref<16x128xf32, #tpu.memory_space<vmem>>, %arg3: memref<16x1xf32, #tpu.memory_space<vmem>>, %arg4: memref<8x1xf32, #tpu.memory_space<vmem>>, %arg5: memref<16x128xf32, #tpu.memory_space<vmem>>) attributes {dimension_semantics = [#tpu.dimension_semantics<parallel>], iteration_bounds = array<i64: 1>, scalar_prefetch = 0 : i64, scratch_operands = 0 : i64, tpu.core_type = #tpu.core_type<tc>, window_params = [{pipeline_mode = #tpu.pipeline_mode<synchronous>, transform_indices = @transform_0, window_bounds = array<i64: 16, 8>}, {transform_indices = @transform_1, window_bounds = array<i64: 16, 128>}, {pipeline_mode = #tpu.pipeline_mode<synchronous>, transform_indices = @transform_2, window_bounds = array<i64: 16, 1>}, {pipeline_mode = #tpu.pipeline_mode<synchronous>, transform_indices = @transform_3, window_bounds = array<i64: 8, 1>}, {transform_indices = @transform_4, window_bounds = array<i64: 16, 128>}]} {
    %c0 = arith.constant 0 : index
    %c0_0 = arith.constant 0 : index
    %0 = vector.load %arg1[%c0, %c0_0] : memref<16x8xbf16, #tpu.memory_space<vmem>>, vector<16x8xbf16>
    %1 = arith.extf %0 : vector<16x8xbf16> to vector<16x8xf32>
    %c0_1 = arith.constant 0 : index
    %c0_2 = arith.constant 0 : index
    %2 = vector.load %arg2[%c0_1, %c0_2] : memref<16x128xf32, #tpu.memory_space<vmem>>, vector<16x128xf32>
    %cst = arith.constant dense<0.000000e+00> : vector<8x128xf32>
    %3 = tpu.matmul %1, %2, %cst {dimension_numbers = #tpu.dot_dimension_numbers<[0], [0], [1], [1], [0, 1, 1, 1], [], []>} : vector<16x8xf32>, vector<16x128xf32>, vector<8x128xf32> -> vector<8x128xf32>
    %c0_3 = arith.constant 0 : index
    %c0_4 = arith.constant 0 : index
    %4 = vector.load %arg4[%c0_3, %c0_4] : memref<8x1xf32, #tpu.memory_space<vmem>>, vector<8x1xf32>
    %5 = vector.broadcast %4 : vector<8x1xf32> to vector<8x128xf32>
    %6 = arith.mulf %3, %5 : vector<8x128xf32>
    %cst_5 = arith.constant dense<0.000000e+00> : vector<16x128xf32>
    %7 = tpu.matmul %1, %6, %cst_5 {dimension_numbers = #tpu.dot_dimension_numbers<[1], [0], [0], [1], [0, 0, 1, 1], [], []>} : vector<16x8xf32>, vector<8x128xf32>, vector<16x128xf32> -> vector<16x128xf32>
    %c0_6 = arith.constant 0 : index
    %c0_7 = arith.constant 0 : index
    %8 = vector.load %arg3[%c0_6, %c0_7] : memref<16x1xf32, #tpu.memory_space<vmem>>, vector<16x1xf32>
    %9 = vector.broadcast %8 : vector<16x1xf32> to vector<16x128xf32>
    %10 = arith.mulf %7, %9 : vector<16x128xf32>
    %c0_8 = arith.constant 0 : index
    %c0_9 = arith.constant 0 : index
    %11 = vector.load %arg5[%c0_8, %c0_9] : memref<16x128xf32, #tpu.memory_space<vmem>>, vector<16x128xf32>
    tpu.vector_store %arg5[%c0_8, %c0_9], %10 {strides = array<i32>} : memref<16x128xf32, #tpu.memory_space<vmem>>, vector<16x128xf32>,
    return
  }
  func.func @transform_0(%arg0: i32) -> (i32, i32) {
    %c0_i32 = arith.constant 0 : i32
    %c0_i32_0 = arith.constant 0 : i32
    %c0_i32_1 = arith.constant 0 : i32
    return %c0_i32, %c0_i32_0 : i32, i32
  }
  func.func @transform_1(%arg0: i32) -> (i32, i32) {
    %c0_i32 = arith.constant 0 : i32
    %c0_i32_0 = arith.constant 0 : i32
    return %c0_i32, %arg0 : i32, i32
  }
  func.func @transform_2(%arg0: i32) -> (i32, i32) {
    %c0_i32 = arith.constant 0 : i32
    %c0_i32_0 = arith.constant 0 : i32
    %c0_i32_1 = arith.constant 0 : i32
    return %c0_i32, %c0_i32_0 : i32, i32
  }
  func.func @transform_3(%arg0: i32) -> (i32, i32) {
    %c0_i32 = arith.constant 0 : i32
    %c0_i32_0 = arith.constant 0 : i32
    %c0_i32_1 = arith.constant 0 : i32
    return %c0_i32, %c0_i32_0 : i32, i32
  }
  func.func @transform_4(%arg0: i32) -> (i32, i32) {
    %c0_i32 = arith.constant 0 : i32
    %c0_i32_0 = arith.constant 0 : i32
    return %c0_i32, %arg0 : i32, i32
  }
}

</mosaic_0001>

<bundles_post_ra>
// kernel: tpu_custom_call.1
= control target key start
LH: loop header
LB: loop body
LE: loop exit
PB: predicated region body
PF: predicated region fallthrough
CT: control target
= control target key end

     0   :  { %v312_v4 = vmov 0.0|0.0   ;;  %vm313_vm0 = vmmov 0   ;;  %v314_v6 = vmov 0.0   ;;  %s374_s0 = inlined_call_operand.vmem [shape: bf16[16,8], index: 0, kind: input, shape index: {}]   ;;  %s375_s1 = inlined_call_operand.vmem [shape: f32[16,128], index: 1, kind: input, shape index: {}]   ;;  %s376_s2 = inlined_call_operand.vmem [shape: f32[16,1], index: 2, kind: input, shape index: {}]   ;;  %s377_s3 = inlined_call_operand.vmem [shape: f32[8,1], index: 3, kind: input, shape index: {}]   ;;  %s378_s4 = inlined_call_operand.hbm [shape: f32[16,128], index: 4, kind: output, shape index: {}]  }
   0x1   :  { %v255_v0 = vld [vmem:[%s374_s0] sm:$0xff]   ;;  %v23_v2 = vld [vmem:[%s375_s1 + $0x8] sm:$0xff]  ;;  %276 = vmatprep.subr.bf16.mxu0 %v312_v4  ;;  %268 = vmatprep.mubr.msk.f32.mxu0 %vm313_vm0, %v314_v6 }
   0x2   :  { %v22_v1 = vld [vmem:[%s375_s1] sm:$0xff]  ;;  %v256_v3 = vunpack.c.l.bf16 %v255_v0 }
   0x3   :  { %v277_v5 = vpack.c.bf16 %v23_v2, %v22_v1 }
   0x4   :  { %9 = vsyncpa [#allocation3], 0  ;;  %24 = vxpose.xlu0.b32.start [1/2] (short) (narrow) %v256_v3, 8  ;;  %v257_v7 = vunpack.c.h.bf16 %v255_v0  ;;  %v130_v8 = vld [vmem:[%s377_s3] sm:$0xff]  ;;  %v315_v9 = vmov 0   ;;  %vm56_vm1 = vcmask 130048  }
   0x5   :  { %278 = vmatpush3.bf16.msra.mxu0 %v277_v5  ;;  %286 = vset.pattern.permute.xlu1 %v315_v9  ;;  %v219_v10 = vld [vmem:[%s376_s2] sm:$0xff]  ;;  %vm137_vm2 = vcmask 64512   ;;  %v220_v12 = vld [vmem:[%s376_s2 + $0x8] sm:$0xff]  ;;  %s316_s3 = smov [#allocation2]  }
   0x6   :  { %133 = vperm.xlu1 %286, %v130_v8   ;;  %273 = vmatprep.mubr.msk.f32.mxu1 %vm137_vm2, %v256_v3  ;;  %s240_s25 = sshll.u32 %s316_s3, 4  ;;  %s241_s25 = int_to_ptr.vmem [resolvable:$true] %s240_s25 }
   0x7   :  { %s288_s2 = scalar_lea.vmem %s241_s25, 256  ;;  %p293_p1 = scmp.lt.s32.totalorder %s241_s25, %s241_s25 }
   0x8   :  { %25 = vxpose.xlu0.b32.end [2/2] (short) (narrow) %v257_v7, 8  ;;  %p289_p0 = scmp.ne.s32.totalorder %s241_s25, %s288_s2  ;;  %p294_p2 = scmp.lt.s32.totalorder %s288_s2, %s288_s2 }
   0xa   :  { %223 = vperm.xlu1 %286, %v219_v10   ;;  %p295_p3 = por %p294_p2, %p293_p1 }
   0xc   :  { %p296_p4 = pnand %p295_p3, %p289_p0 }
  0x31   :  { %287 = vset.pattern.permute.xlu0 %v315_v9 }
  0x32   :  { %228 = vperm.xlu0 %287, %v220_v12  }
  0x84   :  { %v40_v11 = vpop.trf.xlu0 }
  0x85   :  { %269 = vmatmul.mubr.msk.f32.vlgmr.msra.gmra.mrb[0].mxu0 %vm56_vm1, %v40_v11  ;;  %v134_v13 = vpop.permute.xlu1 %133 }
  0x89   :  { %v224_v19 = vpop.permute.xlu1 %223 }
  0xb1   :  { %v229_v17 = vpop.permute.xlu0 %228 }
 0x158   :  { %v126_v14 = vpop.f32.mrb[0].mxu0 }
 0x159   :  { %v136_v15 = vmul.f32 %v134_v13, %v126_v14  ;;  %v270_v16 = vpop.f32.mrb[1].mxu0 }
 0x15b   :  { %271 = vmatprep.subr.mxu1 %v136_v15 }
 0x15c   :  { %272 = vmatpush3.msra.mxu1 %v136_v15 }
 0x15d   :  { %274 = vmatmul.mubr.msk.f32.vlgmr.msra.gmra.mrb[0].mxu1 %vm137_vm2, %v257_v7 }
 0x230   :  { %v275_v18 = vpop.f32.mrb[0].mxu1 }
 0x231   :  { %v232_v20 = vmul.f32 %v275_v18, %v229_v17  ;;  %v210_v21 = vpop.f32.mrb[1].mxu1 }
 0x232   :  { %v231_v22 = vmul.f32 %v224_v19, %v210_v21 }
 0x233   :  { %234 = vst [vmem:[#allocation2 + $0x8] sm:$0xff] %v232_v20 }
 0x234   :  { %233 = vst [vmem:[#allocation2] sm:$0xff] %v231_v22 }
 0x235   :  { %299 = shalt.err (!%p296_p4)
}
 0x236   :  { %s300_s28 = scalar_lea.hbm %s378_s4, 256 }
 0x237   :  { %p301_p5 = scmp.ne.s32.totalorder %s378_s4, %s300_s28  ;;  %p304_p6 = scmp.lt.u32.totalorder %s300_s28, %s378_s4 }
 0x239   :  { %p306_p7 = pnand %p304_p6, %p301_p5 }
 0x23b   :  { %309 = shalt.err (!%p306_p7)
}
 0x23c   :  { %s317_s7 = smov 128   ;;  %s318_s8 = smov 8  }
 0x23d   :  { %246 = dma.vmem_to_hbm [thread:$0]  %s241_s25, 256, %s378_s4, [#allocation3], %s317_s7, %s317_s7, %s318_s8  }
 0x23e   :  { %310 = dma.done.wait [#allocation3], 256  }
 0x23f   :  { %311 = vsyncadd [#allocation3], 4294967040 }
 0x240   :  { %250 = vsyncpa [#allocation3], 1 }

</bundles_post_ra>
